<compile_context>
chip_gen: v7x
topology: tpu7x:2x2x1
jax: 0.10.0
libtpu: 0.0.40
codegen_flags: <defaults>
</compile_context>

<pallas_src>
import functools

import jax
import jax.numpy as jnp
from jax.experimental import pallas as pl
from jax.experimental.pallas import tpu as pltpu


def _round_up(x, m):
    return (x + m - 1) // m * m


def _vmem_capacity_bytes():
    """Physical VMEM of the current generation (fallback: v7x's 64 MiB)."""
    try:
        return int(pltpu.get_tpu_info().vmem_capacity_bytes)
    except Exception:  # interpret mode / older runtimes
        return 64 << 20


def _head_vmem_bytes(n_pad, d_in_p, tk, tf, d_out_p, w_bytes):
    """Conservative VMEM need: 2 buffers per input BlockSpec + output + scratch."""
    return (2 * n_pad * d_in_p * w_bytes      # resident x (count double buffer)
            + 2 * tk * tf * w_bytes           # W1 tile (streamed every step)
            + 2 * 8 * tf * 4                  # b1 tile (sublane-padded)
            + 2 * tf * d_out_p * w_bytes      # W2 tile (changes once per F)
            + 2 * n_pad * d_out_p * 4         # output slab
            + n_pad * tf * 4)                 # h accumulator scratch


def _yolo_head_kernel(x_ref, w1_ref, b1_ref, w2_ref, o_ref, h_acc):
    """Grid (f, k), K innermost.

    x:(n_k, Np, tk) resident   w1:(tk, tf) streamed once   b1:(1, tf)
    w2:(tf, Dout_p) per-F      o:(Np, Dout_p) per-F partial slab (resident over K)
    """
    k = pl.program_id(1)
    nk = pl.num_programs(1)

    @pl.when(k == 0)
    def _():
        h_acc[...] = jnp.zeros_like(h_acc)

    # x is fully resident; pick the K chunk with a dynamic first-axis index.
    h_acc[...] += jnp.dot(x_ref[k], w1_ref[...],
                          preferred_element_type=jnp.float32)

    @pl.when(k == nk - 1)
    def _():
        # Epilogue for this F tile: bias + LeakyReLU(0.1); Dropout(eval) == identity.
        h = h_acc[...] + b1_ref[...]
        h = jnp.where(h > 0, h, 0.1 * h)
        # Partial contribution of this F tile to the output (b2 added in wrapper).
        o_ref[...] = jnp.dot(h.astype(w2_ref.dtype), w2_ref[...],
                             preferred_element_type=jnp.float32)


def make_yolov1_forward(w1_t, b1, w2_t, b2, *, S, B, C,
                        tk=1024, tf=None, weight_dtype=jnp.bfloat16,
                        max_batch=8):
    """Build a jitted YOLOv1-head forward.  Weights are padded/cast ONCE here.

    w1_t: (d_in, fcl)  pre-transposed first Linear weight
    b1:   (fcl,) or (1, fcl)
    w2_t: (fcl, d_out) pre-transposed second Linear weight
    b2:   (d_out,) or (1, d_out)
    """
    S = (S, S) if isinstance(S, int) else tuple(S)
    d_in, fcl = w1_t.shape
    d_out = S[0] * S[1] * (C + B * 5)
    assert w2_t.shape == (fcl, d_out), (w2_t.shape, (fcl, d_out))

    w_bytes = jnp.dtype(weight_dtype).itemsize
    d_out_p = _round_up(d_out, 128)                  # lane-dense output stores
    n_pad_budget = _round_up(max(max_batch, 8), 8)   # batch used for VMEM budgeting

    # ---- tile selection (static, generation-aware) ---------------------------------
    if tf is None:
        # Two F tiles by default so a v7x megacore can shard the parallel axis.
        n_f_target = 2 if fcl > 128 else 1
        tf_eff = _round_up(-(-fcl // n_f_target), 128)
    else:
        tf_eff = _round_up(min(tf, _round_up(fcl, 128)), 128)
    tk_eff = _round_up(min(tk, _round_up(d_in, 128)), 128)

    vmem_cap = _vmem_capacity_bytes()
    headroom = 4 << 20
    budget = int(vmem_cap * 0.85)

    def _need(tk_i, tf_i):
        return _head_vmem_bytes(n_pad_budget, _round_up(d_in, tk_i),
                                tk_i, tf_i, d_out_p, w_bytes) + headroom

    # Shrink tk first (only lengthens the K stream), then tf, until the tiles fit.
    while _need(tk_eff, tf_eff) > budget and tk_eff > 128:
        tk_eff = max(128, _round_up(tk_eff // 2, 128))
    while _need(tk_eff, tf_eff) > budget and tf_eff > 128:
        tf_eff = max(128, _round_up(tf_eff // 2, 128))

    d_in_p = _round_up(d_in, tk_eff)
    fcl_p = _round_up(fcl, tf_eff)
    n_k = d_in_p // tk_eff
    n_f = fcl_p // tf_eff

    # ---- one-time weight padding / casting (NOT in the per-call path) --------------
    # Padded regions must stay zero: nonzero garbage in W1's padded columns combined
    # with nonzero garbage in W2's padded rows would leak into real outputs.
    w1_p = jnp.zeros((d_in_p, fcl_p), weight_dtype).at[:d_in, :fcl].set(
        w1_t.astype(weight_dtype))
    b1_p = jnp.zeros((1, fcl_p), jnp.float32).at[:, :fcl].set(
        b1.astype(jnp.float32).reshape(1, -1))
    w2_p = jnp.zeros((fcl_p, d_out_p), weight_dtype).at[:fcl, :d_out].set(
        w2_t.astype(weight_dtype))
    b2_row = b2.astype(jnp.float32).reshape(1, -1)   # added in the wrapper (once)

    def _apply(x_nchw, w1_pd, b1_pd, w2_pd, b2_r):
        N = x_nchw.shape[0]
        assert x_nchw.shape[1] * x_nchw.shape[2] * x_nchw.shape[3] == d_in
        n_pad = _round_up(max(N, 8), 8)

        # nn.Flatten on NCHW -> (N, C*H*W), row-major: matches jnp.reshape.
        x_flat = x_nchw.reshape(N, d_in).astype(weight_dtype)
        x_p = jnp.zeros((n_pad, d_in_p), weight_dtype).at[:N, :d_in].set(x_flat)
        # Resident layout: chunk k of every row lives at x_p3[k] -> (n_k, Np, tk).
        x_p3 = x_p.reshape(n_pad, n_k, tk_eff).swapaxes(0, 1)

        vmem_limit = _head_vmem_bytes(n_pad, d_in_p, tk_eff, tf_eff,
                                      d_out_p, w_bytes) + headroom
        vmem_limit = int(max(min(vmem_limit, int(vmem_cap * 0.9)), 16 << 20))

        out3d = pl.pallas_call(
            _yolo_head_kernel,
            out_shape=jax.ShapeDtypeStruct((n_f, n_pad, d_out_p), jnp.float32),
            grid_spec=pltpu.PrefetchScalarGridSpec(
                num_scalar_prefetch=0,
                grid=(n_f, n_k),                                           # K innermost
                in_specs=[
                    pl.BlockSpec((n_k, n_pad, tk_eff), lambda f, k: (0, 0, 0)),  # x resident
                    pl.BlockSpec((tk_eff, tf_eff), lambda f, k: (k, f)),         # W1 streamed once
                    pl.BlockSpec((1, tf_eff), lambda f, k: (0, f)),              # b1
                    pl.BlockSpec((tf_eff, d_out_p), lambda f, k: (f, 0)),        # W2 once per F
                ],
                out_specs=pl.BlockSpec((None, n_pad, d_out_p),
                                       lambda f, k: (f, 0, 0)),
                scratch_shapes=[pltpu.VMEM((n_pad, tf_eff), jnp.float32)],   # h accumulator
            ),
            compiler_params=pltpu.CompilerParams(
                # F tiles write disjoint output slabs -> "parallel" (megacore on v7x);
                # K carries the resident h accumulator -> "arbitrary".
                dimension_semantics=("parallel", "arbitrary"),
                vmem_limit_bytes=vmem_limit,
            ),
        )(x_p3, w1_pd, b1_pd, w2_pd)

        # Reduce the per-F partial slabs, add b2, drop padding, final reshape.
        out2d = out3d.sum(axis=0)[:N, :d_out] + b2_r
        return out2d.reshape(N, S[0], S[1], C + B * 5)

    apply_jit = jax.jit(_apply)

    def forward(x_nchw):
        return apply_jit(x_nchw, w1_p, b1_p, w2_p, b2_row)

    return forward


def init_params(key, d_in, fcl_out, d_out, dtype=jnp.float32):
    """Deterministic PyTorch-Linear-style init (uniform +/- 1/sqrt(fan_in))."""
    k1, k2, k3, k4 = jax.random.split(key, 4)
    lim1 = 1.0 / jnp.sqrt(jnp.float32(d_in))
    lim2 = 1.0 / jnp.sqrt(jnp.float32(fcl_out))
    # Weights stored pre-transposed: (in, out), so the kernel does x @ W.
    w1_t = jax.random.uniform(k1, (d_in, fcl_out), dtype, -lim1, lim1)
    b1 = jax.random.uniform(k2, (1, fcl_out), dtype, -lim1, lim1)
    w2_t = jax.random.uniform(k3, (fcl_out, d_out), dtype, -lim2, lim2)
    b2 = jax.random.uniform(k4, (1, d_out), dtype, -lim2, lim2)
    return w1_t, b1, w2_t, b2


if __name__ == "__main__":
    # Scaled-down YOLOv1 head, chosen so the grid really has multiple F and K tiles
    # with tk=tf=128:
    #   S=(2,4), B=2, C=9 -> per-cell channels = 19, d_out = 2*4*19 = 152
    #   backbone_out_channels=32 -> d_in = 32*2*4 = 256, fcl_out=256, batch=2
    S = (2, 4)
    B = 2
    C = 9
    backbone_out_channels = 32
    fcl_out = 256
    batch = 2

    d_in = backbone_out_channels * S[0] * S[1]
    d_out = S[0] * S[1] * (C + B * 5)

    key = jax.random.PRNGKey(0)
    kx, kp = jax.random.split(key)

    # Backbone output features, NCHW (backbone treated as identity).
    x = jax.random.normal(kx, (batch, backbone_out_channels, S[0], S[1]), jnp.float32)
    w1_t, b1, w2_t, b2 = init_params(kp, d_in, fcl_out, d_out)

    # Build once: weights are padded / cast to bf16 a single time here, not per call.
    forward = make_yolov1_forward(w1_t, b1, w2_t, b2, S=S, B=B, C=C,
                                  tk=128, tf=128, weight_dtype=jnp.bfloat16)

    out = jax.block_until_ready(forward(x))

    # Pure-JAX reference with the same bf16-weight / f32-accumulate math.
    w1_bf = w1_t.astype(jnp.bfloat16)
    w2_bf = w2_t.astype(jnp.bfloat16)
    x_flat = x.reshape(batch, d_in).astype(jnp.bfloat16)
    h = jnp.dot(x_flat, w1_bf, preferred_element_type=jnp.float32) + b1
    h = jnp.where(h > 0, h, 0.1 * h)
    ref = jnp.dot(h.astype(jnp.bfloat16), w2_bf, preferred_element_type=jnp.float32) + b2
    ref = ref.reshape(batch, S[0], S[1], C + B * 5)

    assert out.shape == (batch, S[0], S[1], C + B * 5)
    err = float(jnp.max(jnp.abs(out - ref)))
    assert jnp.allclose(out, ref, atol=2e-2, rtol=2e-2), err

    print("KERNEL_OK")
</pallas_src>

<mosaic_0001>
module attributes {stable_mosaic.version = 11 : i64} {
  func.func @_yolo_head_kernel(%arg0: i32, %arg1: i32, %arg2: memref<2x8x128xbf16, #tpu.memory_space<vmem>>, %arg3: memref<128x128xbf16, #tpu.memory_space<vmem>>, %arg4: memref<1x128xf32, #tpu.memory_space<vmem>>, %arg5: memref<128x256xbf16, #tpu.memory_space<vmem>>, %arg6: memref<1x8x256xf32, #tpu.memory_space<vmem>>, %arg7: memref<8x128xf32, #tpu.memory_space<vmem>>) attributes {dimension_semantics = [#tpu.dimension_semantics<parallel>, #tpu.dimension_semantics<arbitrary>], iteration_bounds = array<i64: 2, 2>, scalar_prefetch = 0 : i64, scratch_operands = 1 : i64, tpu.core_type = #tpu.core_type<tc>, window_params = [{pipeline_mode = #tpu.pipeline_mode<synchronous>, transform_indices = @transform_0, window_bounds = array<i64: 2, 8, 128>}, {transform_indices = @transform_1, window_bounds = array<i64: 128, 128>}, {transform_indices = @transform_2, window_bounds = array<i64: 1, 128>}, {transform_indices = @transform_3, window_bounds = array<i64: 128, 256>}, {transform_indices = @transform_4, window_bounds = array<i64: 1, 8, 256>}]} {
    %c0_i32 = arith.constant 0 : i32
    %0 = arith.cmpi eq, %arg1, %c0_i32 : i32
    %1 = arith.extui %0 : i1 to i32
    %c0_i32_0 = arith.constant 0 : i32
    %2 = arith.cmpi ne, %1, %c0_i32_0 : i32
    scf.if %2 {
      %cst_9 = arith.constant 0.000000e+00 : f32
      %14 = vector.broadcast %cst_9 : f32 to vector<8x128xf32>
      %c0_10 = arith.constant 0 : index
      %c0_11 = arith.constant 0 : index
      %15 = vector.load %arg7[%c0_10, %c0_11] : memref<8x128xf32, #tpu.memory_space<vmem>>, vector<8x128xf32>
      tpu.vector_store %arg7[%c0_10, %c0_11], %14 {strides = array<i32>} : memref<8x128xf32, #tpu.memory_space<vmem>>, vector<8x128xf32>,
    } else {
    }
    %c0 = arith.constant 0 : index
    %c0_1 = arith.constant 0 : index
    %3 = vector.load %arg7[%c0, %c0_1] : memref<8x128xf32, #tpu.memory_space<vmem>>, vector<8x128xf32>
    %4 = arith.index_cast %arg1 : i32 to index
    %c0_2 = arith.constant 0 : index
    %c0_3 = arith.constant 0 : index
    %5 = vector.load %arg2[%4, %c0_2, %c0_3] : memref<2x8x128xbf16, #tpu.memory_space<vmem>>, vector<1x8x128xbf16>
    %6 = vector.shape_cast %5 : vector<1x8x128xbf16> to vector<8x128xbf16>
    %c0_4 = arith.constant 0 : index
    %c0_5 = arith.constant 0 : index
    %7 = vector.load %arg3[%c0_4, %c0_5] : memref<128x128xbf16, #tpu.memory_space<vmem>>, vector<128x128xbf16>
    %cst = arith.constant dense<0.000000e+00> : vector<8x128xf32>
    %8 = tpu.matmul %6, %7, %cst {dimension_numbers = #tpu.dot_dimension_numbers<[1], [0], [0], [1], [0, 0, 1, 1], [], []>} : vector<8x128xbf16>, vector<128x128xbf16>, vector<8x128xf32> -> vector<8x128xf32>
    %9 = arith.addf %3, %8 : vector<8x128xf32>
    %c0_6 = arith.constant 0 : index
    %c0_7 = arith.constant 0 : index
    %10 = vector.load %arg7[%c0_6, %c0_7] : memref<8x128xf32, #tpu.memory_space<vmem>>, vector<8x128xf32>
    tpu.vector_store %arg7[%c0_6, %c0_7], %9 {strides = array<i32>} : memref<8x128xf32, #tpu.memory_space<vmem>>, vector<8x128xf32>,
    %c1_i32 = arith.constant 1 : i32
    %11 = arith.cmpi eq, %arg1, %c1_i32 : i32
    %12 = arith.extui %11 : i1 to i32
    %c0_i32_8 = arith.constant 0 : i32
    %13 = arith.cmpi ne, %12, %c0_i32_8 : i32
    scf.if %13 {
      %c0_9 = arith.constant 0 : index
      %c0_10 = arith.constant 0 : index
      %14 = vector.load %arg7[%c0_9, %c0_10] : memref<8x128xf32, #tpu.memory_space<vmem>>, vector<8x128xf32>
      %c0_11 = arith.constant 0 : index
      %c0_12 = arith.constant 0 : index
      %15 = vector.load %arg4[%c0_11, %c0_12] : memref<1x128xf32, #tpu.memory_space<vmem>>, vector<1x128xf32>
      %16 = vector.broadcast %15 : vector<1x128xf32> to vector<8x128xf32>
      %17 = arith.addf %14, %16 : vector<8x128xf32>
      %cst_13 = arith.constant 0.000000e+00 : f32
      %18 = vector.broadcast %cst_13 : f32 to vector<8x128xf32>
      %19 = arith.cmpf ogt, %17, %18 : vector<8x128xf32>
      %cst_14 = arith.constant 1.000000e-01 : f32
      %20 = vector.broadcast %cst_14 : f32 to vector<8x128xf32>
      %21 = arith.mulf %20, %17 : vector<8x128xf32>
      %22 = arith.select %19, %17, %21 : vector<8x128xi1>, vector<8x128xf32>
      %23 = arith.truncf %22 : vector<8x128xf32> to vector<8x128xbf16>
      %c0_15 = arith.constant 0 : index
      %c0_16 = arith.constant 0 : index
      %24 = vector.load %arg5[%c0_15, %c0_16] : memref<128x256xbf16, #tpu.memory_space<vmem>>, vector<128x256xbf16>
      %cst_17 = arith.constant dense<0.000000e+00> : vector<8x256xf32>
      %25 = tpu.matmul %23, %24, %cst_17 {dimension_numbers = #tpu.dot_dimension_numbers<[1], [0], [0], [1], [0, 0, 1, 1], [], []>} : vector<8x128xbf16>, vector<128x256xbf16>, vector<8x256xf32> -> vector<8x256xf32>
      %c0_18 = arith.constant 0 : index
      %c0_19 = arith.constant 0 : index
      %c0_20 = arith.constant 0 : index
      %26 = vector.load %arg6[%c0_18, %c0_19, %c0_20] : memref<1x8x256xf32, #tpu.memory_space<vmem>>, vector<1x8x256xf32>
      %27 = vector.shape_cast %26 : vector<1x8x256xf32> to vector<8x256xf32>
      %28 = vector.shape_cast %25 : vector<8x256xf32> to vector<1x8x256xf32>
      tpu.vector_store %arg6[%c0_18, %c0_19, %c0_20], %28 {strides = array<i32>} : memref<1x8x256xf32, #tpu.memory_space<vmem>>, vector<1x8x256xf32>,
    } else {
    }
    return
  }
  func.func @transform_0(%arg0: i32, %arg1: i32) -> (i32, i32, i32) {
    %c0_i32 = arith.constant 0 : i32
    %c0_i32_0 = arith.constant 0 : i32
    %c0_i32_1 = arith.constant 0 : i32
    %c0_i32_2 = arith.constant 0 : i32
    return %c0_i32, %c0_i32_0, %c0_i32_1 : i32, i32, i32
  }
  func.func @transform_1(%arg0: i32, %arg1: i32) -> (i32, i32) {
    %c0_i32 = arith.constant 0 : i32
    return %arg1, %arg0 : i32, i32
  }
  func.func @transform_2(%arg0: i32, %arg1: i32) -> (i32, i32) {
    %c0_i32 = arith.constant 0 : i32
    %c0_i32_0 = arith.constant 0 : i32
    return %c0_i32, %arg0 : i32, i32
  }
  func.func @transform_3(%arg0: i32, %arg1: i32) -> (i32, i32) {
    %c0_i32 = arith.constant 0 : i32
    %c0_i32_0 = arith.constant 0 : i32
    return %arg0, %c0_i32 : i32, i32
  }
  func.func @transform_4(%arg0: i32, %arg1: i32) -> (i32, i32, i32) {
    %c0_i32 = arith.constant 0 : i32
    %c0_i32_0 = arith.constant 0 : i32
    %c0_i32_1 = arith.constant 0 : i32
    return %arg0, %c0_i32, %c0_i32_0 : i32, i32, i32
  }
}

</mosaic_0001>

<bundles_post_ra>
// kernel: _apply.1
= control target key start
LH: loop header
LB: loop body
LE: loop exit
PB: predicated region body
PF: predicated region fallthrough
CT: control target
= control target key end

     0   :  { %s1398_s0 = inlined_call_operand.vmem [shape: bf16[2,8,128], index: 0, kind: input, shape index: {}]   ;;  %s1399_s1 = inlined_call_operand.hbm [shape: bf16[256,256], index: 1, kind: input, shape index: {}]   ;;  %s1400_s2 = inlined_call_operand.vmem [shape: f32[1,256], index: 2, kind: input, shape index: {}]   ;;  %s1401_s3 = inlined_call_operand.hbm [shape: bf16[256,256], index: 3, kind: input, shape index: {}]   ;;  %s1402_s4 = inlined_call_operand.vmem [shape: f32[2,8,256], index: 4, kind: output, shape index: {}]  }
   0x1   :  { %1409 = sst [smem:[#allocation11_spill]] %s1398_s0 }
   0x2   :  { %9 = vsyncpa [#allocation4], 0 }
   0x3   :  { %11 = vsyncpa [#allocation4 + $0x1], 0 }
   0x4   :  { %12 = vsyncpa [#allocation6], 0 }
   0x5   :  { %14 = vsyncpa [#allocation6 + $0x1], 0  ;;  %s1088_s15 = smov 0   ;;  %s1090_s16 = smov 0  }
   0x6   :  { %s1092_s17 = smov 0   ;;  %s1094_s18 = smov 0  }
   0x7   :  { %s1096_s19 = smov 0   ;;  %s1098_s20 = smov 0  }
   0x8   :  { %s1100_s21 = smov 0   ;;  %s1102_s22 = smov 0  }
   0x9   :  { %s1104_s23 = smov 0   ;;  %s1106_s24 = smov 0  }
   0xa   :  { %s1108_s25 = smov 0  }
   0xb LB: > { %1410 = sst [smem:[#allocation9_spill]] %s1035_s21  ;;  %s29_s26 = sadd.s32 1, %s1043_s23  ;;  %s1051_s25 = sphi %s1108_s25, %s20_s25   ;;  %s1047_s24 = sphi %s1106_s24, %s1437_s24   ;;  %s1043_s23 = sphi %s1104_s23, %s1436_s23   ;;  %s1039_s22 = sphi %s1102_s22, %s1435_s22   ;;  %s1035_s21 = sphi %s1100_s21, %s1434_s21   ;;  %s1031_s20 = sphi %s1098_s20, %s1433_s20   ;;  %s1027_s19 = sphi %s1096_s19, %s1432_s19   ;;  %s1023_s18 = sphi %s1094_s18, %s1431_s18   ;;  %s1019_s17 = sphi %s1092_s17, %s1430_s17   ;;  %s1015_s16 = sphi %s1090_s16, %s1429_s16   ;;  %s1011_s15 = sphi %s1088_s15, %s1428_s15  }
   0xc   : > { %s32_s27 = sadd.s32 1, %s1047_s24  ;;  %p30_p0 = scmp.ge.s32.totalorder %s29_s26, 2 }
   0xd   : > { %s62_s28 = sadd.s32 1, %s1031_s20  ;;  %p69_p1 = scmp.ne.s32.totalorder %s1031_s20, %s1027_s19 }
   0xe   : > { %p1406_p2 = scmp.eq.s32.totalorder %s1051_s25, 0  ;;  %s1439_s26 = smov (%p30_p0, %s29_s26), 0 }
   0xf   : > { %1411 = sst [smem:[#allocation10_spill]] %s1439_s26  ;;  %s1441_s27 = smov (!%p30_p0, %s32_s27), %s1047_s24 }
  0x10   : > { %s57_s29 = ssub.s32 %s1043_s23, %s1439_s26  ;;  %p1156_p3 = por %p1406_p2, %p69_p1 }
  0x11   : > { %p34_p4 = scmp.ge.s32.totalorder %s1441_s27, 2  ;;  %p1405_p6 = scmp.lt.s32.totalorder %s1051_s25, 4 }
  0x12   : > { %s180_s5 = sand.u32 1, %s1031_s20   ;;  %s724_s6 = sshll.u32 %s1043_s23, 5 }
  0x13   : > { %s1443_s27 = smov (%p34_p4, %s1441_s27), 0  ;;  %s681_s9 = sshll.u32 %s180_s5, 6 }
  0x14   : > { %s1169_s7 = ssub.s32 %s1047_s24, %s1443_s27  ;;  %s190_s10 = sadd.s32 %s1047_s24, %s724_s6 }
  0x15   : > { %s59_s8 = sor.u32 %s1169_s7, %s57_s29  ;;  %s684_s12 = sshll.u32 %s190_s10, 6 }
  0x16   : > { %p60_p8 = scmp.eq.s32.totalorder %s59_s8, 0  ;;  %s184_s13 = scalar_lea.vmem [#allocation3], %s681_s9 }
  0x17   : > { %s193_s14 = sshll.u32 %s184_s13, 4  ;;  %s1180_s21 = scalar_lea.hbm %s1399_s1, %s684_s12  ;;  %s1182_s14 = int_to_ptr.vmem [resolvable:$true] %s193_s14 }
  0x18   : > { %s1175_s11 = scalar_select %p60_p8, %s1031_s20, %s62_s28  }
  0x19   : > { %p1188_p9 = pnand %p1405_p6, %p1156_p3  ;;  %p689_p10 = scmp.ge.s32.totalorder %s1051_s25, 1 }
  0x1a   : > { %s1193_s28 = scalar_lea.sflag [#allocation4], %s180_s5  ;;  %s897_s0 = scalar_lea.hbm %s1180_s21, 1024 }
  0x1b   : > { %p898_p11 = scmp.ne.s32.totalorder %s1180_s21, %s897_s0  ;;  %p899_p12 = pneg %p1188_p9 }
  0x1c   : > { %s902_s6 = scalar_lea.hbm %s1399_s1, 4096  ;;  %p903_p1 = scmp.lt.u32.totalorder %s1180_s21, %s1399_s1 }
  0x1d   : > { %p900_p13 = pnand %p899_p12, %p898_p11  ;;  %p904_p3 = scmp.lt.u32.totalorder %s902_s6, %s897_s0 }
  0x1e   : > { %p906_p8 = scmp.lt.u32.totalorder %s897_s0, %s1180_s21 }
  0x1f   : > { %p901_p0 = pneg %p900_p13  ;;  %p905_p4 = por %p904_p3, %p903_p1 }
  0x21   : > { %p907_p6 = por %p906_p8, %p905_p4 }
  0x23   : > { %p908_p2 = pnand %p907_p6, %p901_p0 }
  0x25   : > { %911 = shalt.err (!%p908_p2)
}
  0x26   : > { %s912_s5 = scalar_lea.vmem %s1182_s14, 1024  ;;  %s1053_s10 = smov [#allocation3]  }
  0x27   : > { %p913_p11 = scmp.ne.s32.totalorder %s1182_s14, %s912_s5  ;;  %s917_s12 = sshll.u32 %s1053_s10, 4  ;;  %s918_s12 = int_to_ptr.vmem [resolvable:$false] %s917_s12 }
  0x28   : > { %s919_s13 = scalar_lea.vmem %s918_s12, 2048  ;;  %p920_p7 = scmp.lt.s32.totalorder %s1182_s14, %s918_s12 }
  0x29   : > { %p915_p13 = pnand %p913_p11, %p899_p12  ;;  %p921_p1 = scmp.lt.s32.totalorder %s919_s13, %s912_s5 }
  0x2b   : > { %p916_p5 = pneg %p915_p13  ;;  %p922_p3 = por %p921_p1, %p920_p7 }
  0x2d   : > { %p923_p4 = pnand %p922_p3, %p916_p5 }
  0x2f   : > { %926 = shalt.err (!%p923_p4)
}
  0x30   : > { %s1054_s0 = smov 128   ;;  %s1055_s26 = smov 64  }
  0x31   : > { %s1056_s30 = smov 4   ;;  %p229_p2 = scmp.lt.s32.totalorder %s1051_s25, 5 }
  0x32   : > { %764 = dma.hbm_to_vmem [thread:$0]  (!%p1188_p9), %s1180_s21, 1024, %s1182_s14, %s1193_s28, %s1054_s0, %s1055_s26, %s1056_s30  }
  0x33   : > { %p1225_p5 = pnand %p689_p10, %p229_p2  ;;  %s677_s8 = sadd.s32 4294967295, %s1051_s25  }
  0x34   : > { %s114_s9 = sadd.s32 1, %s1019_s17  ;;  %p76_p6 = scmp.eq.s32.totalorder %s677_s8, 0 }
  0x35   : > { %p121_p7 = scmp.ne.s32.totalorder %s1019_s17, %s1015_s16  ;;  %p1415_p12 = scmp.eq.s32.totalorder %s1169_s7, 0 }
  0x36   : > { %p1416_p0 = scmp.ne.s32.totalorder %s1027_s19, %s1023_s18  ;;  %p1418_p9 = scmp.eq.s32.totalorder %s1051_s25, 0 }
  0x37   : > { %s1236_s5 = scalar_select %p1415_p12, %s1019_s17, %s114_s9  }
  0x38   : > { %p1241_p8 = por %p76_p6, %p1416_p0  ;;  %p123_p11 = por %p121_p7, %p1418_p9 }
  0x39   : > { %p127_p13 = scmp.ne.s32.totalorder %s1015_s16, %s1011_s15  ;;  %s209_s21 = sand.u32 1, %s1019_s17  }
  0x3a   : > { %s1417_s10 = scalar_select %p1241_p8, 1, 0 }
  0x3b   : > { %s685_s14 = sshll.u32 %s209_s21, 7  ;;  %p1250_p10 = por %p127_p13, %p76_p6 }
  0x3c   : > { %s726_s28 = sshll.u32 %s1047_s24, 11  ;;  %s213_s12 = scalar_lea.vmem [#allocation5], %s685_s14 }
  0x3d   : > { %s1419_s29 = scalar_select %p1250_p10, 1, 0 }
  0x3e   : > { %s221_s13 = sshll.u32 %s213_s12, 4  ;;  %s1258_s18 = scalar_lea.hbm %s1401_s3, %s726_s28  ;;  %s1260_s13 = int_to_ptr.vmem [resolvable:$true] %s221_s13 }
  0x3f   : > { %p1420_p1 = scmp.lt.s32.totalorder %s1051_s25, 4  ;;  %s1268_s30 = scalar_lea.sflag [#allocation6], %s209_s21 }
  0x40   : > { %s927_s8 = scalar_lea.hbm %s1258_s18, 2048  ;;  %s932_s28 = scalar_lea.hbm %s1401_s3, 4096 }
  0x41   : > { %p1264_p3 = pnand %p1420_p1, %p123_p11  ;;  %p928_p4 = scmp.ne.s32.totalorder %s1258_s18, %s927_s8 }
  0x42   : > { %p933_p12 = scmp.lt.u32.totalorder %s1258_s18, %s1401_s3  ;;  %p934_p0 = scmp.lt.u32.totalorder %s932_s28, %s927_s8 }
  0x43   : > { %p929_p2 = pneg %p1264_p3  ;;  %p936_p11 = scmp.lt.u32.totalorder %s927_s8, %s1258_s18 }
  0x44   : > { %p935_p9 = por %p934_p0, %p933_p12 }
  0x45   : > { %p930_p6 = pnand %p929_p2, %p928_p4 }
  0x46   : > { %p937_p13 = por %p936_p11, %p935_p9 }
  0x47   : > { %p931_p7 = pneg %p930_p6 }
  0x49   : > { %p938_p1 = pnand %p937_p13, %p931_p7 }
  0x4b   : > { %941 = shalt.err (!%p938_p1)
}
  0x4c   : > { %s942_s21 = scalar_lea.vmem %s1260_s13, 2048  ;;  %s1057_s26 = smov [#allocation5]  }
  0x4d   : > { %p943_p4 = scmp.ne.s32.totalorder %s1260_s13, %s942_s21  ;;  %s947_s9 = sshll.u32 %s1057_s26, 4  ;;  %s948_s9 = int_to_ptr.vmem [resolvable:$false] %s947_s9 }
  0x4e   : > { %s949_s14 = scalar_lea.vmem %s948_s9, 4096  ;;  %p950_p8 = scmp.lt.s32.totalorder %s1260_s13, %s948_s9 }
  0x4f   : > { %p945_p6 = pnand %p943_p4, %p929_p2  ;;  %p951_p12 = scmp.lt.s32.totalorder %s949_s14, %s942_s21 }
  0x51   : > { %p946_p10 = pneg %p945_p6  ;;  %p952_p0 = por %p951_p12, %p950_p8 }
  0x53   : > { %p953_p9 = pnand %p952_p0, %p946_p10 }
  0x55   : > { %956 = shalt.err (!%p953_p9)
}
  0x56   : > { %s1058_s8 = smov 8   ;;  %233 = sbr.rel (%p1225_p5) target bundleno = 590 (0x24e), region = 36 }
  0x57   : > { %767 = dma.hbm_to_vmem [thread:$0]  (!%p1264_p3), %s1258_s18, 2048, %s1260_s13, %s1268_s30, %s1054_s0, %s1054_s0, %s1058_s8  }
  0x58   : > { %s235_s28 = sand.u32 (!%p1225_p5), 1, %s1027_s19   ;;  %p1422_p8 = scmp.ne.s32.totalorder (!%p1225_p5), %s1417_s10, 0 }
  0x59   : > { %s690_s12 = sshll.u32 (!%p1225_p5), %s235_s28, 6  ;;  %s236_s7 = scalar_lea.sflag (!%p1225_p5), [#allocation4], %s235_s28 }
  0x5a   : > { %s1301_s21 = scalar_lea.vmem (!%p1225_p5), [#allocation3], %s690_s12 }
  0x5d   : > { %1002 = dma.done.wait (%p1422_p8), %s236_s7, 1024  }
  0x5e   : > { %1004 = vsyncadd (%p1422_p8), %s236_s7, 4294966272  ;;  %s244_s15 = sand.u32 1, %s1015_s16   ;;  %p1423_p5 = scmp.ne.s32.totalorder %s1419_s29, 0 }
  0x5f   : > { %s691_s26 = sshll.u32 %s244_s15, 7  ;;  %s245_s0 = scalar_lea.sflag [#allocation6], %s244_s15 }
  0x60   : > { %s1308_s13 = scalar_lea.vmem [#allocation5], %s691_s26 }
  0x61   : > { %1006 = dma.done.wait (%p1423_p5), %s245_s0, 2048  }
  0x62   : > { %1008 = vsyncadd (%p1423_p5), %s245_s0, 4294965248  ;;  %p282_p10 = scmp.lt.s32.totalorder %s1039_s22, 1  ;;  %s1424_s28 = sld [smem:[#allocation9_spill]] }
  0x64   : > { %s1445_s22 = smov (!%p282_p10, %s1039_s22), 1 }
  0x65   : > { %s284_s18 = scalar_lea.vmem %s1400_s2, %s1445_s22  ;;  %s727_s30 = sshll.u32 %s1445_s22, 4 }
  0x66   : > { %s1326_s8 = scalar_lea.vmem %s1402_s4, %s727_s30 }
  0x68   : > { %p694_p3 = scmp.ne.s32.totalorder %s1424_s28, 0 }
  0x69   : > { %v1059_v0 = vmov (!%p694_p3), 0.0  }
  0x6a   : > { %295 = sbr.rel (%p694_p3) target bundleno = 113 (0x71), region = 48  ;;  %296 = vst [vmem:[#allocation2] sm:$0xff] (!%p694_p3), %v1059_v0 }
  0x71 PF: > { %v865_v1 = vld [vmem:[%s1301_s21] sm:$0xff]   ;;  %v1060_v2 = vmov 0.0   ;;  %v866_v3 = vld [vmem:[%s1301_s21 + $0x8] sm:$0xff]   ;;  %vm1061_vm0 = vmmov 0   ;;  %s1425_s29 = sld [smem:[#allocation9_spill]]  ;;  %v867_v4 = vld [vmem:[%s1301_s21 + $0x10] sm:$0xff]  }
  0x72   : > { %737 = vmatprep.subr.bf16.mxu0 %v1060_v2  ;;  %753 = vmatprep.mubr.msk.bf16.mxu0 %vm1061_vm0, %v1060_v2  ;;  %v868_v5 = vld [vmem:[%s1301_s21 + $0x18] sm:$0xff]   ;;  %v869_v6 = vld [vmem:[%s1301_s21 + $0x20] sm:$0xff]   ;;  %v870_v7 = vld [vmem:[%s1301_s21 + $0x28] sm:$0xff]   ;;  %s1426_s26 = sld [smem:[#allocation11_spill]] }
  0x73   : > { %738 = vmatpush3.bf16.msra.mxu0 %v865_v1  ;;  %v871_v8 = vld [vmem:[%s1301_s21 + $0x30] sm:$0xff]   ;;  %v872_v9 = vld [vmem:[%s1301_s21 + $0x38] sm:$0xff]  }
  0x74   : > { %739 = vmatprep.subr.bf16.mxu0 %v1060_v2  ;;  %v297_v11 = vld [vmem:[#allocation2] sm:$0xff] }
  0x77   : > { %740 = vmatpush3.bf16.msra.mxu0 %v866_v3  ;;  %s695_s12 = sshll.u32 %s1425_s29, 2  ;;  %p704_p2 = scmp.ne.s32.totalorder %s1425_s29, 1 }
  0x78   : > { %741 = vmatprep.subr.bf16.mxu0 %v1060_v2  ;;  %s299_s0 = scalar_lea.vmem %s1426_s26, %s695_s12  ;;  %v873_v17 = vld [vmem:[%s1308_s13 + $0x4] ss:$8 sps:$4 sm:$0xff] (!%p704_p2)   ;;  %v875_v18 = vld [vmem:[%s1308_s13] ss:$8 sps:$4 sm:$0xff] (!%p704_p2)   ;;  %v1062_v19 = vmov (!%p704_p2), 0  }
  0x79   : > { %v300_v10 = vld [vmem:[%s299_s0] sm:$0xf]  ;;  %v876_v20 = vld [vmem:[%s1308_s13 + $0x14] ss:$8 sps:$4 sm:$0xff] (!%p704_p2)   ;;  %v879_v22 = vld [vmem:[%s1308_s13 + $0x24] ss:$8 sps:$4 sm:$0xff] (!%p704_p2)  }
  0x7a   : > { %v878_v21 = vld [vmem:[%s1308_s13 + $0x10] ss:$8 sps:$4 sm:$0xff] (!%p704_p2)   ;;  %v881_v23 = vld [vmem:[%s1308_s13 + $0x20] ss:$8 sps:$4 sm:$0xff] (!%p704_p2)   ;;  %v882_v24 = vld [vmem:[%s1308_s13 + $0x34] ss:$8 sps:$4 sm:$0xff] (!%p704_p2)  }
  0x7b   : > { %742 = vmatpush3.bf16.msra.mxu0 %v867_v4  ;;  %v884_v25 = vld [vmem:[%s1308_s13 + $0x30] ss:$8 sps:$4 sm:$0xff] (!%p704_p2)   ;;  %v885_v26 = vld [vmem:[%s1308_s13 + $0x44] ss:$8 sps:$4 sm:$0xff] (!%p704_p2)   ;;  %v887_v27 = vld [vmem:[%s1308_s13 + $0x40] ss:$8 sps:$4 sm:$0xff] (!%p704_p2)  }
  0x7c   : > { %743 = vmatprep.subr.bf16.mxu0 %v1060_v2  ;;  %v888_v28 = vld [vmem:[%s1308_s13 + $0x54] ss:$8 sps:$4 sm:$0xff] (!%p704_p2)   ;;  %v705_v30 = vld [vmem:[%s284_s18] ss:$0 sm:$0xff] (!%p704_p2)  ;;  %v891_v33 = vld [vmem:[%s1308_s13 + $0x64] ss:$8 sps:$4 sm:$0xff] (!%p704_p2)  }
  0x7d   : > { %v890_v31 = vld [vmem:[%s1308_s13 + $0x50] ss:$8 sps:$4 sm:$0xff] (!%p704_p2)   ;;  %v893_v34 = vld [vmem:[%s1308_s13 + $0x60] ss:$8 sps:$4 sm:$0xff] (!%p704_p2)   ;;  %v894_v36 = vld [vmem:[%s1308_s13 + $0x74] ss:$8 sps:$4 sm:$0xff] (!%p704_p2)  }
  0x7e   : > { %v896_v37 = vld [vmem:[%s1308_s13 + $0x70] ss:$8 sps:$4 sm:$0xff] (!%p704_p2)  }
  0x7f   : > { %744 = vmatpush3.bf16.msra.mxu0 %v868_v5 }
  0x80   : > { %745 = vmatprep.subr.bf16.mxu0 %v1060_v2 }
  0x83   : > { %746 = vmatpush3.bf16.msra.mxu0 %v869_v6 }
  0x84   : > { %747 = vmatprep.subr.bf16.mxu0 %v1060_v2 }
  0x87   : > { %748 = vmatpush3.bf16.msra.mxu0 %v870_v7 }
  0x88   : > { %749 = vmatprep.subr.bf16.mxu0 %v1060_v2 }
  0x8b   : > { %750 = vmatpush3.bf16.msra.mxu0 %v871_v8 }
  0x8c   : > { %751 = vmatprep.subr.bf16.mxu0 %v1060_v2 }
  0x8f   : > { %752 = vmatpush3.bf16.msra.mxu0 %v872_v9 }
  0x90   : > { %520 = vmatprep.subr.bf16.mxu0 (!%p704_p2), %v873_v17 }
  0x92   : > { %754 = vmatmul.mubr.bf16.vlgmr.msra.gmra.mrb[0].mxu0 %v300_v10 }
  0x93   : > { %552 = vmatprep.mubr.bf16.mxu0 (!%p704_p2), %v1062_v19  ;;  %521 = vmatpush1.bf16.msra.mxu0 (!%p704_p2), %v875_v18 }
  0x94   : > { %522 = vmatprep.subr.bf16.mxu0 (!%p704_p2), %v876_v20 }
  0x97   : > { %523 = vmatpush1.bf16.msra.mxu0 (!%p704_p2), %v878_v21 }
  0x98   : > { %524 = vmatprep.subr.bf16.mxu0 (!%p704_p2), %v879_v22 }
  0x9b   : > { %525 = vmatpush1.bf16.msra.mxu0 (!%p704_p2), %v881_v23 }
  0x9c   : > { %526 = vmatprep.subr.bf16.mxu0 (!%p704_p2), %v882_v24 }
  0x9f   : > { %527 = vmatpush1.bf16.msra.mxu0 (!%p704_p2), %v884_v25 }
  0xa0   : > { %528 = vmatprep.subr.bf16.mxu0 (!%p704_p2), %v885_v26 }
  0xa3   : > { %529 = vmatpush1.bf16.msra.mxu0 (!%p704_p2), %v887_v27 }
  0xa4   : > { %530 = vmatprep.subr.bf16.mxu0 (!%p704_p2), %v888_v28 }
  0xa7   : > { %531 = vmatpush1.bf16.msra.mxu0 (!%p704_p2), %v890_v31 }
  0xa8   : > { %532 = vmatprep.subr.bf16.mxu0 (!%p704_p2), %v891_v33 }
  0xab   : > { %533 = vmatpush1.bf16.msra.mxu0 (!%p704_p2), %v893_v34 }
  0xac   : > { %534 = vmatprep.subr.bf16.mxu0 (!%p704_p2), %v894_v36 }
  0xaf   : > { %535 = vmatpush1.bf16.msra.mxu0 (!%p704_p2), %v896_v37 }
 0x162   : > { %410 = sbr.rel (%p704_p2) target bundleno = 590 (0x24e), region = 52 }
 0x165   : > { %v399_v12 = vpop.f32.mrb[0].mxu0 }
 0x166   : > { %v405_v13 = vadd.f32 %v399_v12, %v297_v11  ;;  %v755_v14 = vpop.f32.mrb[1].mxu0 }
 0x167   : > { %v402_v15 = vpop.f32.mrb[2].mxu0 }
 0x168   : > { %406 = vst [vmem:[#allocation2] sm:$0xff] %v405_v13  ;;  %v756_v16 = vpop.f32.mrb[3].mxu0 }
 0x16f   : > { %v411_v29 = vld [vmem:[#allocation2] sm:$0xff] }
 0x170   : > { %v419_v32 = vadd.f32 %v705_v30, %v411_v29 }
 0x172   : > { %v421_v35 = vmul.f32 0.1, %v419_v32  ;;  %vm420_vm1 = vcmp.gt.f32.partialorder %v419_v32, 0.0 }
 0x174   : > { %v422_v38 = vsel %vm420_vm1, %v419_v32, %v421_v35 }
 0x175   : > { %v423_v39 = vpack.c.bf16 %v422_v38, %v422_v38 }
 0x177   : > { %553 = vmatmul.mubr.bf16.vlgmr.msra.gmra.mrb[0].mxu0 %v423_v39 }
 0x24a   : > { %v554_v40 = vpop.f32.mrb[0].mxu0 }
 0x24b   : > { %561 = vst [vmem:[%s1326_s8] sm:$0xff] %v554_v40  ;;  %v556_v41 = vpop.f32.mrb[1].mxu0 }
 0x24c   : > { %562 = vst [vmem:[%s1326_s8 + $0x8] sm:$0xff] %v556_v41  ;;  %v558_v42 = vpop.f32.mrb[2].mxu0 }
 0x24d   : > { %v559_v43 = vpop.f32.mrb[3].mxu0 }
 0x24e PF: > { %s20_s25 = sadd.s32 1, %s1051_s25   ;;  %s1427_s13 = sld [smem:[#allocation10_spill]] }
 0x24f   : > { %p17_p7 = scmp.ge.s32.totalorder %s20_s25, 6   ;;  %s1428_s15 = smov %s1015_s16 }
 0x250   : > { %s1429_s16 = smov %s1019_s17  ;;  %s1430_s17 = smov %s1236_s5 }
 0x251   : > { %s1431_s18 = smov %s1027_s19  ;;  %s1432_s19 = smov %s1031_s20 }
 0x252   : > { %s1433_s20 = smov %s1175_s11  ;;  %s1434_s21 = smov %s1043_s23 }
 0x253   : > { %s1435_s22 = smov %s1047_s24  ;;  %s1437_s24 = smov %s1443_s27 }
 0x254   : > { %s1436_s23 = smov %s1427_s13  ;;  %19 = sbr.rel (!%p17_p7) target bundleno = 11 (0xb), region = 101 }
 0x25b   :  { %584 = vsyncpa [#allocation4], 1 }
 0x25c   :  { %586 = vsyncpa [#allocation4 + $0x1], 1 }
 0x25d   :  { %587 = vsyncpa [#allocation6], 1 }
 0x25e   :  { %589 = vsyncpa [#allocation6 + $0x1], 1 }

</bundles_post_ra>
